<compile_context>
chip_gen: v5e
topology: v5e:2x2
jax: 0.10.0
libtpu: 0.0.40
codegen_flags: <defaults>
</compile_context>

<pallas_src>
import numpy as np
import jax
import jax.numpy as jnp
from jax.experimental import pallas as pl
from jax.experimental.pallas import tpu as pltpu

HIDDEN = 128


def _round_up(x, m):
    return ((x + m - 1) // m) * m


def _mlp_kernel(obs_ref, act_ref,
                w1o_ref, w1a_ref, b1_ref,
                w2_ref, b2_ref,
                w3_ref, b3_ref,
                w4_ref, b4_ref,
                o_ref):
    # bf16 operands into the MXU, f32 accumulate; elementwise work in f32.
    obs = obs_ref[...].astype(jnp.bfloat16)
    act = act_ref[...].astype(jnp.bfloat16)
    h = (jnp.dot(obs, w1o_ref[...].astype(jnp.bfloat16),
                 preferred_element_type=jnp.float32)
         + jnp.dot(act, w1a_ref[...].astype(jnp.bfloat16),
                   preferred_element_type=jnp.float32)
         + b1_ref[...])
    h = jnp.maximum(h, 0.0)
    h = jnp.dot(h.astype(jnp.bfloat16), w2_ref[...].astype(jnp.bfloat16),
                preferred_element_type=jnp.float32) + b2_ref[...]
    h = jnp.maximum(h, 0.0)
    h = jnp.dot(h.astype(jnp.bfloat16), w3_ref[...].astype(jnp.bfloat16),
                preferred_element_type=jnp.float32) + b3_ref[...]
    h = jnp.maximum(h, 0.0)
    # Final layer (out_features=1): VPU multiply + lane reduction instead of an
    # N=1 MXU matmul. w4_ref is the weight row reshaped to (1, 128).
    q = jnp.sum(h * w4_ref[...], axis=-1, keepdims=True) + b4_ref[...]
    o_ref[...] = q.astype(o_ref.dtype)


def init_params(key, in_dim):
    """PyTorch nn.Linear-style init: U(-1/sqrt(fan_in), +1/sqrt(fan_in))."""
    dims = [(in_dim, HIDDEN), (HIDDEN, HIDDEN), (HIDDEN, HIDDEN), (HIDDEN, 1)]
    params = []
    for (fi, fo) in dims:
        key, kw, kb = jax.random.split(key, 3)
        bound = 1.0 / np.sqrt(fi)
        w = jax.random.uniform(kw, (fi, fo), jnp.float32, -bound, bound)
        b = jax.random.uniform(kb, (1, fo), jnp.float32, -bound, bound)
        params.append((w, b))
    return params


def sa_qsa_net(obs, act, params, *, tile_batch=512):
    """obs: (B, *state_shape), act: (B, *action_shape) -> q: (B, 1) f32."""
    B = obs.shape[0]
    obs_f = obs.reshape(B, -1).astype(jnp.float32)
    act_f = act.reshape(B, -1).astype(jnp.float32)
    ds, da = obs_f.shape[1], act_f.shape[1]

    (w1, b1), (w2, b2), (w3, b3), (w4, b4) = params

    # Split W1 (avoids the wrapper concat) and zero-pad tiny K dims to x8.
    ds_p, da_p = _round_up(ds, 8), _round_up(da, 8)
    w1o = jnp.pad(w1[:ds], ((0, ds_p - ds), (0, 0)))
    w1a = jnp.pad(w1[ds:], ((0, da_p - da), (0, 0)))
    obs_f = jnp.pad(obs_f, ((0, 0), (0, ds_p - ds)))
    act_f = jnp.pad(act_f, ((0, 0), (0, da_p - da)))
    w4_row = w4.reshape(1, HIDDEN)
    b4_s = b4.reshape(1, 1)

    # Batch tiling: TB multiple of 8, capped (fits v7x's smaller VMEM easily).
    tb = min(tile_batch, _round_up(B, 8))
    b_pad = _round_up(B, tb)
    if b_pad != B:
        obs_f = jnp.pad(obs_f, ((0, b_pad - B), (0, 0)))
        act_f = jnp.pad(act_f, ((0, b_pad - B), (0, 0)))
    grid = (b_pad // tb,)

    resident = lambda shape: pl.BlockSpec(shape, lambda i: (0,) * len(shape))

    flops = 2 * b_pad * HIDDEN * (ds_p + da_p + 2 * HIDDEN + 1)
    bytes_accessed = 4 * (b_pad * (ds_p + da_p + 1)
                          + (ds_p + da_p + 2 * HIDDEN + 1) * HIDDEN
                          + 3 * HIDDEN + 1)

    out = pl.pallas_call(
        _mlp_kernel,
        out_shape=jax.ShapeDtypeStruct((b_pad, 1), jnp.float32),
        grid=grid,
        in_specs=[
            pl.BlockSpec((tb, ds_p), lambda i: (i, 0)),
            pl.BlockSpec((tb, da_p), lambda i: (i, 0)),
            resident(w1o.shape), resident(w1a.shape), resident(b1.shape),
            resident(w2.shape), resident(b2.shape),
            resident(w3.shape), resident(b3.shape),
            resident(w4_row.shape), resident(b4_s.shape),
        ],
        out_specs=pl.BlockSpec((tb, 1), lambda i: (i, 0)),
        compiler_params=pltpu.CompilerParams(
            dimension_semantics=("parallel",),
            vmem_limit_bytes=32 * 1024 * 1024),
        cost_estimate=pl.CostEstimate(flops=flops, transcendentals=0,
                                      bytes_accessed=bytes_accessed),
    )(obs_f, act_f, w1o, w1a, b1, w2, b2, w3, b3, w4_row, b4_s)
    return out[:B]


def _reference(obs, act, params):
    batch = obs.shape[0]
    x = jnp.concatenate([obs.reshape(batch, -1), act.reshape(batch, -1)], axis=1)
    (w1, b1), (w2, b2), (w3, b3), (w4, b4) = params
    h = jnp.maximum(x @ w1 + b1, 0.0)
    h = jnp.maximum(h @ w2 + b2, 0.0)
    h = jnp.maximum(h @ w3 + b3, 0.0)
    return h @ w4 + b4


if __name__ == "__main__":
    # Small synthetic env shapes: state_shape=(4,4), action_shape=(2,)
    state_shape = (4, 4)
    action_shape = (2,)
    in_dim = int(np.prod(state_shape) + np.prod(action_shape))  # 18

    key = jax.random.PRNGKey(0)
    k_obs, k_act, k_par, k_obs2, k_act2 = jax.random.split(key, 5)
    params = init_params(k_par, in_dim)

    # Small batch (pads batch tile internally).
    obs = jax.random.normal(k_obs, (2,) + state_shape, jnp.float32)
    act = jax.random.normal(k_act, (2,) + action_shape, jnp.float32)
    q = jax.block_until_ready(sa_qsa_net(obs, act, params))
    assert q.shape == (2, 1)
    np.testing.assert_allclose(np.asarray(q),
                               np.asarray(_reference(obs, act, params)),
                               rtol=3e-2, atol=3e-2)  # bf16 matmul tolerance

    # Non-multiple batch exercises the multi-tile pipelined grid + tail padding.
    obs2 = jax.random.normal(k_obs2, (1030,) + state_shape, jnp.float32)
    act2 = jax.random.normal(k_act2, (1030,) + action_shape, jnp.float32)
    q2 = jax.block_until_ready(sa_qsa_net(obs2, act2, params))
    assert q2.shape == (1030, 1)
    np.testing.assert_allclose(np.asarray(q2),
                               np.asarray(_reference(obs2, act2, params)),
                               rtol=3e-2, atol=3e-2)

    print("KERNEL_OK")
</pallas_src>

<mosaic_0001>
module attributes {stable_mosaic.version = 11 : i64} {
  func.func @_mlp_kernel(%arg0: i32, %arg1: memref<8x16xf32, #tpu.memory_space<vmem>>, %arg2: memref<8x8xf32, #tpu.memory_space<vmem>>, %arg3: memref<16x128xf32, #tpu.memory_space<vmem>>, %arg4: memref<8x128xf32, #tpu.memory_space<vmem>>, %arg5: memref<1x128xf32, #tpu.memory_space<vmem>>, %arg6: memref<128x128xf32, #tpu.memory_space<vmem>>, %arg7: memref<1x128xf32, #tpu.memory_space<vmem>>, %arg8: memref<128x128xf32, #tpu.memory_space<vmem>>, %arg9: memref<1x128xf32, #tpu.memory_space<vmem>>, %arg10: memref<1x128xf32, #tpu.memory_space<vmem>>, %arg11: memref<1x1xf32, #tpu.memory_space<vmem>>, %arg12: memref<8x1xf32, #tpu.memory_space<vmem>>) attributes {dimension_semantics = [#tpu.dimension_semantics<parallel>], iteration_bounds = array<i64: 1>, scalar_prefetch = 0 : i64, scratch_operands = 0 : i64, tpu.core_type = #tpu.core_type<tc>, window_params = [{transform_indices = @transform_0, window_bounds = array<i64: 8, 16>}, {transform_indices = @transform_1, window_bounds = array<i64: 8, 8>}, {pipeline_mode = #tpu.pipeline_mode<synchronous>, transform_indices = @transform_2, window_bounds = array<i64: 16, 128>}, {pipeline_mode = #tpu.pipeline_mode<synchronous>, transform_indices = @transform_3, window_bounds = array<i64: 8, 128>}, {pipeline_mode = #tpu.pipeline_mode<synchronous>, transform_indices = @transform_4, window_bounds = array<i64: 1, 128>}, {pipeline_mode = #tpu.pipeline_mode<synchronous>, transform_indices = @transform_5, window_bounds = array<i64: 128, 128>}, {pipeline_mode = #tpu.pipeline_mode<synchronous>, transform_indices = @transform_6, window_bounds = array<i64: 1, 128>}, {pipeline_mode = #tpu.pipeline_mode<synchronous>, transform_indices = @transform_7, window_bounds = array<i64: 128, 128>}, {pipeline_mode = #tpu.pipeline_mode<synchronous>, transform_indices = @transform_8, window_bounds = array<i64: 1, 128>}, {pipeline_mode = #tpu.pipeline_mode<synchronous>, transform_indices = @transform_9, window_bounds = array<i64: 1, 128>}, {pipeline_mode = #tpu.pipeline_mode<synchronous>, transform_indices = @transform_10, window_bounds = array<i64: 1, 1>}, {transform_indices = @transform_11, window_bounds = array<i64: 8, 1>}]} {
    %c0 = arith.constant 0 : index
    %c0_0 = arith.constant 0 : index
    %0 = vector.load %arg1[%c0, %c0_0] : memref<8x16xf32, #tpu.memory_space<vmem>>, vector<8x16xf32>
    %1 = arith.truncf %0 : vector<8x16xf32> to vector<8x16xbf16>
    %c0_1 = arith.constant 0 : index
    %c0_2 = arith.constant 0 : index
    %2 = vector.load %arg2[%c0_1, %c0_2] : memref<8x8xf32, #tpu.memory_space<vmem>>, vector<8x8xf32>
    %3 = arith.truncf %2 : vector<8x8xf32> to vector<8x8xbf16>
    %c0_3 = arith.constant 0 : index
    %c0_4 = arith.constant 0 : index
    %4 = vector.load %arg3[%c0_3, %c0_4] : memref<16x128xf32, #tpu.memory_space<vmem>>, vector<16x128xf32>
    %5 = arith.truncf %4 : vector<16x128xf32> to vector<16x128xbf16>
    %cst = arith.constant dense<0.000000e+00> : vector<8x128xf32>
    %6 = tpu.matmul %1, %5, %cst {dimension_numbers = #tpu.dot_dimension_numbers<[1], [0], [0], [1], [0, 0, 1, 1], [], []>} : vector<8x16xbf16>, vector<16x128xbf16>, vector<8x128xf32> -> vector<8x128xf32>
    %c0_5 = arith.constant 0 : index
    %c0_6 = arith.constant 0 : index
    %7 = vector.load %arg4[%c0_5, %c0_6] : memref<8x128xf32, #tpu.memory_space<vmem>>, vector<8x128xf32>
    %8 = arith.truncf %7 : vector<8x128xf32> to vector<8x128xbf16>
    %cst_7 = arith.constant dense<0.000000e+00> : vector<8x128xf32>
    %9 = tpu.matmul %3, %8, %cst_7 {dimension_numbers = #tpu.dot_dimension_numbers<[1], [0], [0], [1], [0, 0, 1, 1], [], []>} : vector<8x8xbf16>, vector<8x128xbf16>, vector<8x128xf32> -> vector<8x128xf32>
    %10 = arith.addf %6, %9 : vector<8x128xf32>
    %c0_8 = arith.constant 0 : index
    %c0_9 = arith.constant 0 : index
    %11 = vector.load %arg5[%c0_8, %c0_9] : memref<1x128xf32, #tpu.memory_space<vmem>>, vector<1x128xf32>
    %12 = vector.broadcast %11 : vector<1x128xf32> to vector<8x128xf32>
    %13 = arith.addf %10, %12 : vector<8x128xf32>
    %cst_10 = arith.constant 0.000000e+00 : f32
    %14 = vector.broadcast %cst_10 : f32 to vector<8x128xf32>
    %15 = arith.maximumf %13, %14 : vector<8x128xf32>
    %16 = arith.truncf %15 : vector<8x128xf32> to vector<8x128xbf16>
    %c0_11 = arith.constant 0 : index
    %c0_12 = arith.constant 0 : index
    %17 = vector.load %arg6[%c0_11, %c0_12] : memref<128x128xf32, #tpu.memory_space<vmem>>, vector<128x128xf32>
    %18 = arith.truncf %17 : vector<128x128xf32> to vector<128x128xbf16>
    %cst_13 = arith.constant dense<0.000000e+00> : vector<8x128xf32>
    %19 = tpu.matmul %16, %18, %cst_13 {dimension_numbers = #tpu.dot_dimension_numbers<[1], [0], [0], [1], [0, 0, 1, 1], [], []>} : vector<8x128xbf16>, vector<128x128xbf16>, vector<8x128xf32> -> vector<8x128xf32>
    %c0_14 = arith.constant 0 : index
    %c0_15 = arith.constant 0 : index
    %20 = vector.load %arg7[%c0_14, %c0_15] : memref<1x128xf32, #tpu.memory_space<vmem>>, vector<1x128xf32>
    %21 = vector.broadcast %20 : vector<1x128xf32> to vector<8x128xf32>
    %22 = arith.addf %19, %21 : vector<8x128xf32>
    %cst_16 = arith.constant 0.000000e+00 : f32
    %23 = vector.broadcast %cst_16 : f32 to vector<8x128xf32>
    %24 = arith.maximumf %22, %23 : vector<8x128xf32>
    %25 = arith.truncf %24 : vector<8x128xf32> to vector<8x128xbf16>
    %c0_17 = arith.constant 0 : index
    %c0_18 = arith.constant 0 : index
    %26 = vector.load %arg8[%c0_17, %c0_18] : memref<128x128xf32, #tpu.memory_space<vmem>>, vector<128x128xf32>
    %27 = arith.truncf %26 : vector<128x128xf32> to vector<128x128xbf16>
    %cst_19 = arith.constant dense<0.000000e+00> : vector<8x128xf32>
    %28 = tpu.matmul %25, %27, %cst_19 {dimension_numbers = #tpu.dot_dimension_numbers<[1], [0], [0], [1], [0, 0, 1, 1], [], []>} : vector<8x128xbf16>, vector<128x128xbf16>, vector<8x128xf32> -> vector<8x128xf32>
    %c0_20 = arith.constant 0 : index
    %c0_21 = arith.constant 0 : index
    %29 = vector.load %arg9[%c0_20, %c0_21] : memref<1x128xf32, #tpu.memory_space<vmem>>, vector<1x128xf32>
    %30 = vector.broadcast %29 : vector<1x128xf32> to vector<8x128xf32>
    %31 = arith.addf %28, %30 : vector<8x128xf32>
    %cst_22 = arith.constant 0.000000e+00 : f32
    %32 = vector.broadcast %cst_22 : f32 to vector<8x128xf32>
    %33 = arith.maximumf %31, %32 : vector<8x128xf32>
    %c0_23 = arith.constant 0 : index
    %c0_24 = arith.constant 0 : index
    %34 = vector.load %arg10[%c0_23, %c0_24] : memref<1x128xf32, #tpu.memory_space<vmem>>, vector<1x128xf32>
    %35 = vector.broadcast %34 : vector<1x128xf32> to vector<8x128xf32>
    %36 = arith.mulf %33, %35 : vector<8x128xf32>
    %cst_25 = arith.constant dense<0.000000e+00> : vector<8xf32>
    %37 = vector.multi_reduction <add>, %36, %cst_25 [1] : vector<8x128xf32> to vector<8xf32>
    %38 = vector.shape_cast %37 : vector<8xf32> to vector<8x1xf32>
    %c0_26 = arith.constant 0 : index
    %c0_27 = arith.constant 0 : index
    %39 = vector.load %arg11[%c0_26, %c0_27] : memref<1x1xf32, #tpu.memory_space<vmem>>, vector<1x1xf32>
    %40 = vector.broadcast %39 : vector<1x1xf32> to vector<8x1xf32>
    %41 = arith.addf %38, %40 : vector<8x1xf32>
    %c0_28 = arith.constant 0 : index
    %c0_29 = arith.constant 0 : index
    %42 = vector.load %arg12[%c0_28, %c0_29] : memref<8x1xf32, #tpu.memory_space<vmem>>, vector<8x1xf32>
    tpu.vector_store %arg12[%c0_28, %c0_29], %41 {strides = array<i32>} : memref<8x1xf32, #tpu.memory_space<vmem>>, vector<8x1xf32>,
    return
  }
  func.func @transform_0(%arg0: i32) -> (i32, i32) {
    %c0_i32 = arith.constant 0 : i32
    %c0_i32_0 = arith.constant 0 : i32
    return %arg0, %c0_i32 : i32, i32
  }
  func.func @transform_1(%arg0: i32) -> (i32, i32) {
    %c0_i32 = arith.constant 0 : i32
    %c0_i32_0 = arith.constant 0 : i32
    return %arg0, %c0_i32 : i32, i32
  }
  func.func @transform_2(%arg0: i32) -> (i32, i32) {
    %c0_i32 = arith.constant 0 : i32
    %c0_i32_0 = arith.constant 0 : i32
    %c0_i32_1 = arith.constant 0 : i32
    return %c0_i32, %c0_i32_0 : i32, i32
  }
  func.func @transform_3(%arg0: i32) -> (i32, i32) {
    %c0_i32 = arith.constant 0 : i32
    %c0_i32_0 = arith.constant 0 : i32
    %c0_i32_1 = arith.constant 0 : i32
    return %c0_i32, %c0_i32_0 : i32, i32
  }
  func.func @transform_4(%arg0: i32) -> (i32, i32) {
    %c0_i32 = arith.constant 0 : i32
    %c0_i32_0 = arith.constant 0 : i32
    %c0_i32_1 = arith.constant 0 : i32
    return %c0_i32, %c0_i32_0 : i32, i32
  }
  func.func @transform_5(%arg0: i32) -> (i32, i32) {
    %c0_i32 = arith.constant 0 : i32
    %c0_i32_0 = arith.constant 0 : i32
    %c0_i32_1 = arith.constant 0 : i32
    return %c0_i32, %c0_i32_0 : i32, i32
  }
  func.func @transform_6(%arg0: i32) -> (i32, i32) {
    %c0_i32 = arith.constant 0 : i32
    %c0_i32_0 = arith.constant 0 : i32
    %c0_i32_1 = arith.constant 0 : i32
    return %c0_i32, %c0_i32_0 : i32, i32
  }
  func.func @transform_7(%arg0: i32) -> (i32, i32) {
    %c0_i32 = arith.constant 0 : i32
    %c0_i32_0 = arith.constant 0 : i32
    %c0_i32_1 = arith.constant 0 : i32
    return %c0_i32, %c0_i32_0 : i32, i32
  }
  func.func @transform_8(%arg0: i32) -> (i32, i32) {
    %c0_i32 = arith.constant 0 : i32
    %c0_i32_0 = arith.constant 0 : i32
    %c0_i32_1 = arith.constant 0 : i32
    return %c0_i32, %c0_i32_0 : i32, i32
  }
  func.func @transform_9(%arg0: i32) -> (i32, i32) {
    %c0_i32 = arith.constant 0 : i32
    %c0_i32_0 = arith.constant 0 : i32
    %c0_i32_1 = arith.constant 0 : i32
    return %c0_i32, %c0_i32_0 : i32, i32
  }
  func.func @transform_10(%arg0: i32) -> (i32, i32) {
    %c0_i32 = arith.constant 0 : i32
    %c0_i32_0 = arith.constant 0 : i32
    %c0_i32_1 = arith.constant 0 : i32
    return %c0_i32, %c0_i32_0 : i32, i32
  }
  func.func @transform_11(%arg0: i32) -> (i32, i32) {
    %c0_i32 = arith.constant 0 : i32
    %c0_i32_0 = arith.constant 0 : i32
    return %arg0, %c0_i32 : i32, i32
  }
}

</mosaic_0001>

<bundles_post_ra>
// kernel: tpu_custom_call.1
= control target key start
LH: loop header
LB: loop body
LE: loop exit
PB: predicated region body
PF: predicated region fallthrough
CT: control target
= control target key end

     0   :  { %s561_s0 = inlined_call_operand.hbm [shape: f32[8,16], index: 0, kind: input, shape index: {}]   ;;  %s562_s1 = inlined_call_operand.hbm [shape: f32[8,8], index: 1, kind: input, shape index: {}]   ;;  %s563_s2 = inlined_call_operand.hbm [shape: f32[16,128], index: 2, kind: input, shape index: {}]   ;;  %s564_s3 = inlined_call_operand.hbm [shape: f32[8,128], index: 3, kind: input, shape index: {}]   ;;  %s565_s4 = inlined_call_operand.vmem [shape: f32[1,128], index: 4, kind: input, shape index: {}]   ;;  %s566_s5 = inlined_call_operand.hbm [shape: f32[128,128], index: 5, kind: input, shape index: {}]   ;;  %s567_s6 = inlined_call_operand.vmem [shape: f32[1,128], index: 6, kind: input, shape index: {}]   ;;  %s568_s7 = inlined_call_operand.hbm [shape: f32[128,128], index: 7, kind: input, shape index: {}]   ;;  %s569_s8 = inlined_call_operand.vmem [shape: f32[1,128], index: 8, kind: input, shape index: {}]   ;;  %s570_s9 = inlined_call_operand.vmem [shape: f32[1,128], index: 9, kind: input, shape index: {}]   ;;  %s571_s10 = inlined_call_operand.<no memory space> [shape: f32[1,1], index: 10, kind: input, shape index: {}]   ;;  %s572_s11 = inlined_call_operand.vmem [shape: f32[8,1], index: 11, kind: output, shape index: {}]  }
   0x1   :  { %v16_v0 = vstv %s571_s10 }
   0x2   :  { %17 = vst [vmem:[#allocation2] sm:$0x1] %v16_v0 }
   0x3   :  { %18 = vsyncpa [#allocation4], 0 }
   0x4   :  { %19 = vsyncpa [#allocation6], 0 }
   0x5   :  { %20 = vsyncpa [#allocation9], 0  ;;  %s38_s21 = sshll.u32 %s562_s1, 4  ;;  %s39_s21 = int_to_ptr.hbm [resolvable:$true] %s38_s21 }
   0x6   :  { %21 = vsyncpa [#allocation12], 0  ;;  %s457_s22 = smov [#allocation5]   ;;  %s62_s26 = sshll.u32 %s564_s3, 4  ;;  %s63_s26 = int_to_ptr.hbm [resolvable:$true] %s62_s26 }
   0x7   :  { %s40_s23 = sshll.u32 %s457_s22, 4  ;;  %s458_s10 = smov [#allocation8]   ;;  %s41_s23 = int_to_ptr.vmem [resolvable:$true] %s40_s23 }
   0x8   :  { %43 = dma.hbm_to_vmem [thread:$0]  %s39_s21, 128, %s41_s23, [#allocation6]  }
   0x9   :  { %s64_s27 = sshll.u32 %s458_s10, 4  ;;  %s27_s30 = sshll.u32 %s561_s0, 4  ;;  %s65_s27 = int_to_ptr.vmem [resolvable:$true] %s64_s27  ;;  %s28_s30 = int_to_ptr.hbm [resolvable:$true] %s27_s30 }
   0xa   :  { %67 = dma.hbm_to_vmem [thread:$0]  %s63_s26, 128, %s65_s27, [#allocation9]  }
   0xb   :  { %s48_s13 = sshll.u32 %s563_s2, 4  ;;  %s459_s14 = smov [#allocation3]   ;;  %s49_s13 = int_to_ptr.hbm [resolvable:$true] %s48_s13 }
   0xc   :  { %s29_s15 = sshll.u32 %s459_s14, 4  ;;  %s460_s3 = smov [#allocation7]   ;;  %s30_s15 = int_to_ptr.vmem [resolvable:$true] %s29_s15 }
   0xd   :  { %32 = dma.hbm_to_vmem [thread:$0]  %s28_s30, 128, %s30_s15, [#allocation4]  }
   0xe   :  { %s50_s16 = sshll.u32 %s460_s3, 4  ;;  %s461_s17 = smov 128   ;;  %s51_s16 = int_to_ptr.vmem [resolvable:$true] %s50_s16 }
   0xf   :  { %s462_s18 = smov 8   ;;  %s74_s20 = sshll.u32 %s566_s5, 4  ;;  %s75_s20 = int_to_ptr.hbm [resolvable:$true] %s74_s20 }
  0x10   :  { %56 = dma.hbm_to_vmem [thread:$0]  %s49_s13, 256, %s51_s16, [#allocation6], %s461_s17, %s461_s17, %s462_s18  }
  0x11   :  { %s463_s21 = smov [#allocation10]   ;;  %s89_s24 = sshll.u32 %s568_s7, 4  ;;  %s90_s24 = int_to_ptr.hbm [resolvable:$true] %s89_s24 }
  0x12   :  { %s76_s22 = sshll.u32 %s463_s21, 4  ;;  %s464_s25 = smov [#allocation11]   ;;  %s77_s22 = int_to_ptr.vmem [resolvable:$true] %s76_s22 }
  0x13   :  { %82 = dma.hbm_to_vmem [thread:$0]  %s75_s20, 2048, %s77_s22, [#allocation9], %s461_s17, %s461_s17, %s462_s18  }
  0x14   :  { %s91_s26 = sshll.u32 %s464_s25, 4  ;;  %s92_s26 = int_to_ptr.vmem [resolvable:$true] %s91_s26 }
  0x15   :  { %97 = dma.hbm_to_vmem [thread:$0]  %s90_s24, 2048, %s92_s26, [#allocation12], %s461_s17, %s461_s17, %s462_s18  }
  0x16   :  { %449 = dma.done.wait [#allocation4], 128  }
  0x17   :  { %450 = vsyncadd [#allocation4], 4294967168 }
  0x18   :  { %451 = dma.done.wait [#allocation6], 384  }
  0x19   :  { %452 = vsyncadd [#allocation6], 4294966912 }
  0x1a   :  { %453 = dma.done.wait [#allocation9], 2176  }
  0x1b   :  { %454 = vsyncadd [#allocation9], 4294965120 }
  0x1c   :  { %455 = dma.done.wait [#allocation12], 2048  }
  0x1d   :  { %456 = vsyncadd [#allocation12], 4294965248  ;;  %v133_v1 = vld [vmem:[#allocation7] sm:$0xff]  ;;  %v134_v2 = vld [vmem:[#allocation7 + $0x8] sm:$0xff]  ;;  %vm142_vm0 = vcmask 1043456   ;;  %vm159_vm1 = vcmask 130048  }
  0x1e   :  { %v136_v3 = vld [vmem:[#allocation8] sm:$0xff]  ;;  %v135_v4 = vpack.c.bf16 %v134_v2, %v133_v1  ;;  %v131_v7 = vld [vmem:[#allocation5] sm:$0xff]  ;;  %v197_v8 = vld [vmem:[#allocation10 + $0x70] sm:$0xff]  ;;  %vm138_vm2 = vcmask 64512   ;;  %vm280_vm3 = vcmask 7168  }
  0x1f   :  { %v137_v5 = vpack.c.bf16 %v136_v3, %v136_v3  ;;  %v129_v6 = vld [vmem:[#allocation3] sm:$0xff]  ;;  %v195_v11 = vld [vmem:[#allocation10 + $0x60] sm:$0xff]  ;;  %v196_v12 = vld [vmem:[#allocation10 + $0x68] sm:$0xff]  ;;  %v132_v14 = vpack.c.bf16 %v131_v7, %v131_v7 }
  0x20   :  { %v130_v9 = vpack.c.bf16 %v129_v6, %v129_v6  ;;  %v198_v10 = vld [vmem:[#allocation10 + $0x78] sm:$0xff]  ;;  %170 = vmatpush.bf16.msra.mxu1 %v135_v4  ;;  %v205_v16 = vpack.c.bf16 %v196_v12, %v195_v11  ;;  %v193_v17 = vld [vmem:[#allocation10 + $0x50] sm:$0xff]  ;;  %v191_v20 = vld [vmem:[#allocation10 + $0x40] sm:$0xff] }
  0x21   :  { %v144_v13 = vsel %vm142_vm0, %v137_v5, 0  ;;  %v206_v15 = vpack.c.bf16 %v198_v10, %v197_v8  ;;  %v194_v18 = vld [vmem:[#allocation10 + $0x58] sm:$0xff]  ;;  %v192_v21 = vld [vmem:[#allocation10 + $0x48] sm:$0xff]  ;;  %v189_v23 = vld [vmem:[#allocation10 + $0x30] sm:$0xff] }
  0x22   :  { %153 = vmatpush.bf16.msra.mxu0 %v144_v13  ;;  %v204_v19 = vpack.c.bf16 %v194_v18, %v193_v17  ;;  %v203_v22 = vpack.c.bf16 %v192_v21, %v191_v20  ;;  %v190_v24 = vld [vmem:[#allocation10 + $0x38] sm:$0xff]  ;;  %v187_v26 = vld [vmem:[#allocation10 + $0x20] sm:$0xff]  ;;  %v188_v27 = vld [vmem:[#allocation10 + $0x28] sm:$0xff] }
  0x23   :  { %211 = vmatpush.bf16.msra.mxu2 %v206_v15  ;;  %291 = vmatmul.msk.bf16.vlgmr.msra.gmra.mxu1 %vm159_vm1, %v130_v9  ;;  %v202_v25 = vpack.c.bf16 %v190_v24, %v189_v23  ;;  %v201_v28 = vpack.c.bf16 %v188_v27, %v187_v26  ;;  %v185_v29 = vld [vmem:[#allocation10 + $0x10] sm:$0xff]  ;;  %v186_v30 = vld [vmem:[#allocation10 + $0x18] sm:$0xff]  ;;  %v183_v32 = vld [vmem:[#allocation10] sm:$0xff] }
  0x24   :  { %v200_v31 = vpack.c.bf16 %v186_v30, %v185_v29  ;;  %v184_v33 = vld [vmem:[#allocation10 + $0x8] sm:$0xff]  ;;  %v240_v35 = vld [vmem:[#allocation11 + $0x70] sm:$0xff]  ;;  %v241_v36 = vld [vmem:[#allocation11 + $0x78] sm:$0xff] }
  0x25   :  { %290 = vmatmul.msk.bf16.vlgmr.msra.gmra.mxu0 %vm138_vm2, %v132_v14  ;;  %v199_v34 = vpack.c.bf16 %v184_v33, %v183_v32  ;;  %v238_v37 = vld [vmem:[#allocation11 + $0x60] sm:$0xff]  ;;  %v249_v38 = vpack.c.bf16 %v241_v36, %v240_v35  ;;  %v239_v39 = vld [vmem:[#allocation11 + $0x68] sm:$0xff]  ;;  %v236_v41 = vld [vmem:[#allocation11 + $0x50] sm:$0xff] }
  0x26   :  { %v248_v40 = vpack.c.bf16 %v239_v39, %v238_v37  ;;  %v237_v42 = vld [vmem:[#allocation11 + $0x58] sm:$0xff]  ;;  %v234_v44 = vld [vmem:[#allocation11 + $0x40] sm:$0xff]  ;;  %v235_v45 = vld [vmem:[#allocation11 + $0x48] sm:$0xff] }
  0x27   :  { %212 = vmatpush.bf16.msra.mxu2 %v205_v16  ;;  %254 = vmatpush.bf16.msra.mxu3 %v249_v38  ;;  %v247_v43 = vpack.c.bf16 %v237_v42, %v236_v41  ;;  %v246_v46 = vpack.c.bf16 %v235_v45, %v234_v44  ;;  %v232_v47 = vld [vmem:[#allocation11 + $0x30] sm:$0xff]  ;;  %v233_v48 = vld [vmem:[#allocation11 + $0x38] sm:$0xff]  ;;  %v230_v50 = vld [vmem:[#allocation11 + $0x20] sm:$0xff] }
  0x28   :  { %v245_v49 = vpack.c.bf16 %v233_v48, %v232_v47  ;;  %v231_v51 = vld [vmem:[#allocation11 + $0x28] sm:$0xff]  ;;  %v300_v54 = vld [vmem:[%s565_s4] ss:$0 sm:$0xff]  ;;  %v229_v63 = vld [vmem:[#allocation11 + $0x18] sm:$0xff] }
  0x29   :  { %v244_v52 = vpack.c.bf16 %v231_v51, %v230_v50  ;;  %v228_v62 = vld [vmem:[#allocation11 + $0x10] sm:$0xff]  ;;  %v226_v1 = vld [vmem:[#allocation11] sm:$0xff]  ;;  %v227_v2 = vld [vmem:[#allocation11 + $0x8] sm:$0xff] }
  0x2a   :  { %v243_v0 = vpack.c.bf16 %v229_v63, %v228_v62  ;;  %v242_v3 = vpack.c.bf16 %v227_v2, %v226_v1  ;;  %v301_v4 = vld [vmem:[%s567_s6] ss:$0 sm:$0xff] }
  0x2b   :  { %213 = vmatpush.bf16.msra.mxu2 %v204_v19  ;;  %255 = vmatpush.bf16.msra.mxu3 %v248_v40  ;;  %v302_v10 = vld [vmem:[%s569_s8] ss:$0 sm:$0xff] }
  0x2c   :  { %v303_v13 = vld [vmem:[%s570_s9] ss:$0 sm:$0xff] }
  0x2d   :  { %v304_v17 = vld [vmem:[#allocation2] ss:$0 sm:$0xff] }
  0x2f   :  { %214 = vmatpush.bf16.msra.mxu2 %v203_v22  ;;  %256 = vmatpush.bf16.msra.mxu3 %v247_v43 }
  0x33   :  { %215 = vmatpush.bf16.msra.mxu2 %v202_v25  ;;  %257 = vmatpush.bf16.msra.mxu3 %v246_v46 }
  0x37   :  { %216 = vmatpush.bf16.msra.mxu2 %v201_v28  ;;  %258 = vmatpush.bf16.msra.mxu3 %v245_v49 }
  0x3b   :  { %217 = vmatpush.bf16.msra.mxu2 %v200_v31  ;;  %259 = vmatpush.bf16.msra.mxu3 %v244_v52 }
  0x3f   :  { %218 = vmatpush.bf16.msra.mxu2 %v199_v34  ;;  %260 = vmatpush.bf16.msra.mxu3 %v243_v0 }
  0x43   :  { %261 = vmatpush.bf16.msra.mxu3 %v242_v3 }
  0xa0   :  { %v172_v53 = vpop.f32.mrf.mxu1 }
  0xa2   :  { %v155_v55 = vpop.f32.mrf.mxu0 }
  0xa3   :  { %v173_v56 = vadd.f32 %v172_v53, %v155_v55 }
  0xa5   :  { %v180_v57 = vadd.f32 %v300_v54, %v173_v56 }
  0xa7   :  { %v181_v58 = vmax.f32 %v180_v57, 0.0 }
  0xa8   :  { %v174_v59 = vpop.f32.mrf.mxu1 }
  0xa9   :  { %v182_v60 = vpack.c.bf16 %v181_v58, %v181_v58 }
  0xaa   :  { %v157_v61 = vpop.f32.mrf.mxu0 }
  0xab   :  { %219 = vmatmul.bf16.vlgmr.msra.gmra.mxu2 %v182_v60 }
 0x12e   :  { %v220_v5 = vpop.f32.mrf.mxu2 }
 0x12f   :  { %v221_v6 = vadd.f32 %v301_v4, %v220_v5 }
 0x131   :  { %v224_v7 = vmax.f32 %v221_v6, 0.0 }
 0x133   :  { %v225_v8 = vpack.c.bf16 %v224_v7, %v224_v7 }
 0x135   :  { %262 = vmatmul.bf16.vlgmr.msra.gmra.mxu3 %v225_v8 }
 0x136   :  { %v222_v9 = vpop.f32.mrf.mxu2 }
 0x1b8   :  { %v263_v11 = vpop.f32.mrf.mxu3 }
 0x1b9   :  { %v264_v12 = vadd.f32 %v302_v10, %v263_v11 }
 0x1bb   :  { %v267_v14 = vmax.f32 %v264_v12, 0.0 }
 0x1bd   :  { %v272_v15 = vmul.f32 %v303_v13, %v267_v14 }
 0x1bf   :  { %273 = vadd.xlane.f32.xlu0 %v272_v15 }
 0x1c0   :  { %v265_v16 = vpop.f32.mrf.mxu3 }
 0x232   :  { %v274_v18 = vpop.xlane.xlu0 %273 }
 0x233   :  { %v279_v19 = vadd.f32 %v304_v17, %v274_v18 }
 0x235   :  { %281 = vst.msk [vmem:[%s572_s11] sm:$0xff] %vm280_vm3, %v279_v19 }
 0x236   :  { %286 = vsyncpa [#allocation4], 1 }
 0x237   :  { %287 = vsyncpa [#allocation6], 1 }
 0x238   :  { %288 = vsyncpa [#allocation9], 1 }
 0x239   :  { %289 = vsyncpa [#allocation12], 1 }

</bundles_post_ra>
